<compile_context>
chip_gen: v6e
topology: v6e:2x2x1
jax: 0.10.0
libtpu: 0.0.40
codegen_flags: <defaults>
</compile_context>

<pallas_src>
import functools

import jax
import jax.numpy as jnp
from jax.experimental import pallas as pl
from jax.experimental.pallas import tpu as pltpu

EPS = 1e-6
_MAX_TILE_N = 256     # multiple of 8
_MAX_TILE_L = 4096    # multiple of 128; 256x4096 f32 double-buffered ~= 17 MiB


def _round_up(x: int, m: int) -> int:
    return ((x + m - 1) // m) * m


def _dice_loss_kernel(x_ref, t_ref, out_ref, inter_acc, union_acc, *,
                      tile_n, tile_l, n_valid, seq_len, mask_tail):
    """Grid = (batch tiles [parallel], sequence tiles [reduction])."""
    # All pl.program_id / pl.num_programs queries are hoisted to the top level
    # of the kernel body; calling them inside a pl.when branch fails to lower
    # in interpret mode and buys nothing on hardware.
    i = pl.program_id(0)
    k = pl.program_id(1)
    nk = pl.num_programs(1)

    @pl.when(k == 0)
    def _init():
        inter_acc[...] = jnp.zeros_like(inter_acc)
        union_acc[...] = jnp.zeros_like(union_acc)

    # Native-dtype loads (bf16 inputs stay bf16 for the multiply); reductions
    # accumulate in f32 via the sum dtype so precision matches the reference.
    p = x_ref[...]                              # (tile_n, tile_l) channel-1
    t = t_ref[...]                              # (tile_n, tile_l) target

    if mask_tail:
        # Ragged last sequence tile: zero out-of-range lanes BEFORE the sums so
        # garbage lanes never pollute intersection / union of valid rows.
        lane = jax.lax.broadcasted_iota(jnp.int32, p.shape, 1)
        valid = lane < (seq_len - k * tile_l)
        p = jnp.where(valid, p, jnp.zeros_like(p))
        t = jnp.where(valid, t, jnp.zeros_like(t))

    inter_acc[...] += jnp.sum(p * t, axis=1, keepdims=True, dtype=jnp.float32)
    union_acc[...] += (jnp.sum(p, axis=1, keepdims=True, dtype=jnp.float32)
                       + jnp.sum(t, axis=1, keepdims=True, dtype=jnp.float32))

    @pl.when(k == nk - 1)
    def _finalize():
        inter = inter_acc[...]                              # (tile_n, 1)
        union = union_acc[...]                              # (tile_n, 1)
        dice = 2.0 * inter / (union + EPS)                  # off the hot path
        # Mask padded / out-of-range batch rows so they never bias the mean
        # (garbage rows may hold NaN/Inf; jnp.where keeps that out).
        row = i * tile_n + jax.lax.broadcasted_iota(jnp.int32, (tile_n, 1), 0)
        contrib = jnp.where(row < n_valid, 1.0 - dice, 0.0)
        partial = jnp.sum(contrib)
        # Lane-dense broadcast write (full (8,128) tile -> unmasked stores).
        out_ref[...] = jnp.full(out_ref.shape, partial, dtype=jnp.float32)


def dice_loss(inp: jax.Array, target: jax.Array) -> jax.Array:
    """inp: (N, 2, L) scores, target: (N, L). Returns scalar float32 loss."""
    if inp.ndim != 3 or inp.shape[1] != 2:
        raise ValueError(f"Invalid input shape, expect (N, 2, L). Got: {inp.shape}")
    if inp.shape[-1] != target.shape[-1] or inp.shape[0] != target.shape[0]:
        raise ValueError(
            f"input and target shapes must match. Got: {inp.shape}, {target.shape}")

    n, _, seq_len = inp.shape

    # ---- Batch tiling: sublane-aligned and >= 2 tiles whenever N allows, so
    # the "parallel" grid axis shards across both v7x TensorCores.
    if n > 8:
        tile_n = min(_MAX_TILE_N, _round_up(pl.cdiv(n, 2), 8))
    else:
        tile_n = _round_up(max(n, 1), 8)
        # TODO(synk): for tiny N, split the sequence reduction into two
        # parallel halves so both v7x TCs still get work.
    num_n_tiles = pl.cdiv(n, tile_n)

    # ---- Channel-1 select.
    # Fast path: fold the select into the input DMA on a free (N, 2L) view
    # (channel 1 occupies column blocks [L/tile_l, 2L/tile_l)); channel 0 never
    # leaves HBM. Requires a 128-multiple tile_l that divides L exactly.
    tile_l_div = 0
    if seq_len % 128 == 0:
        for cand in range(min(_MAX_TILE_L, seq_len), 127, -128):
            if seq_len % cand == 0:
                tile_l_div = cand
                break
    zero_copy = tile_l_div > 0 and (tile_l_div >= 512 or tile_l_div == seq_len)

    if zero_copy:
        tile_l = tile_l_div
        mask_tail = False
        x = inp.reshape(n, 2 * seq_len)               # free, contiguous view
        col_off = seq_len // tile_l
        x_spec = pl.BlockSpec((tile_n, tile_l), lambda i, k: (i, k + col_off))
    else:
        # Awkward L (not 128-aligned, or only a narrow divisor exists):
        # materialize the channel-1 slice once (one N*L read+write) instead of
        # zero-padding the whole (N, 2, L) tensor, then tile freely with an
        # in-kernel masked ragged tail. Wide tiles stay near the HBM roofline.
        tile_l = min(_MAX_TILE_L, _round_up(seq_len, 128))
        mask_tail = (seq_len % tile_l) != 0
        x = inp[:, 1, :]
        x_spec = pl.BlockSpec((tile_n, tile_l), lambda i, k: (i, k))

    num_l_tiles = pl.cdiv(seq_len, tile_l)
    t_spec = pl.BlockSpec((tile_n, tile_l), lambda i, k: (i, k))

    kernel = functools.partial(
        _dice_loss_kernel, tile_n=tile_n, tile_l=tile_l, n_valid=n,
        seq_len=seq_len, mask_tail=mask_tail)

    # Double-buffered input working set; give the compiler explicit headroom
    # (scoped default is 16-32 MiB) while staying well under v7x's 64 MiB VMEM.
    in_bytes = 2 * tile_n * tile_l * (x.dtype.itemsize + target.dtype.itemsize)
    vmem_limit = min(48 << 20, max(24 << 20, int(in_bytes * 3 // 2) + (4 << 20)))

    cost = pl.CostEstimate(
        flops=4 * n * seq_len + 8 * n,
        transcendentals=0,
        bytes_accessed=(n * seq_len * (x.dtype.itemsize + target.dtype.itemsize)
                        + num_n_tiles * 8 * 128 * 4),
    )

    partials = pl.pallas_call(
        kernel,
        out_shape=jax.ShapeDtypeStruct((num_n_tiles, 8, 128), jnp.float32),
        grid_spec=pltpu.PrefetchScalarGridSpec(
            num_scalar_prefetch=0,
            grid=(num_n_tiles, num_l_tiles),
            in_specs=[x_spec, t_spec],
            out_specs=pl.BlockSpec((1, 8, 128), lambda i, k: (i, 0, 0)),
            scratch_shapes=[
                pltpu.VMEM((tile_n, 1), jnp.float32),   # intersection partials
                pltpu.VMEM((tile_n, 1), jnp.float32),   # union partials
            ],
        ),
        compiler_params=pltpu.CompilerParams(
            dimension_semantics=("parallel", "arbitrary"),
            vmem_limit_bytes=vmem_limit,
        ),
        cost_estimate=cost,
    )(x, target)

    # Tiny epilogue: sum the per-batch-tile partials, mean over the true N.
    return jnp.sum(partials[:, 0, 0]) / n


def _dice_loss_ref(inp, target):
    preds = inp[:, 1, :]
    inter = jnp.sum(preds * target, axis=1)
    union = jnp.sum(preds + target, axis=1)
    dice = 2.0 * inter / (union + EPS)
    return jnp.mean(1.0 - dice)


if __name__ == "__main__":
    key = jax.random.PRNGKey(0)
    keys = jax.random.split(key, 6)

    # Case 1: 128-aligned L -> zero-copy channel select, single L tile.
    n1, l1 = 4, 512
    inp1 = jax.random.uniform(keys[0], (n1, 2, l1), dtype=jnp.float32)
    tgt1 = jax.random.uniform(keys[1], (n1, l1), dtype=jnp.float32)
    out1 = jax.block_until_ready(dice_loss(inp1, tgt1))
    ref1 = _dice_loss_ref(inp1, tgt1)
    assert jnp.allclose(out1, ref1, atol=1e-5, rtol=1e-5), (out1, ref1)

    # Case 2: tiny unaligned L -> channel-slice fallback with masked ragged tile.
    n2, l2 = 2, 8
    inp2 = jax.random.uniform(keys[2], (n2, 2, l2), dtype=jnp.float32)
    tgt2 = jax.random.uniform(keys[3], (n2, l2), dtype=jnp.float32)
    out2 = jax.block_until_ready(dice_loss(inp2, tgt2))
    ref2 = _dice_loss_ref(inp2, tgt2)
    assert jnp.allclose(out2, ref2, atol=1e-5, rtol=1e-5), (out2, ref2)

    # Case 3: multiple (ragged) batch tiles on the parallel axis.
    n3, l3 = 20, 384
    inp3 = jax.random.uniform(keys[4], (n3, 2, l3), dtype=jnp.float32)
    tgt3 = jax.random.uniform(keys[5], (n3, l3), dtype=jnp.float32)
    out3 = jax.block_until_ready(dice_loss(inp3, tgt3))
    ref3 = _dice_loss_ref(inp3, tgt3)
    assert jnp.allclose(out3, ref3, atol=1e-5, rtol=1e-5), (out3, ref3)

    print("KERNEL_OK")
</pallas_src>

<mosaic_0001>
module attributes {stable_mosaic.version = 11 : i64} {
  func.func @_dice_loss_kernel(%arg0: i32, %arg1: i32, %arg2: memref<8x512xf32, #tpu.memory_space<vmem>>, %arg3: memref<8x512xf32, #tpu.memory_space<vmem>>, %arg4: memref<1x8x128xf32, #tpu.memory_space<vmem>>, %arg5: memref<8x1xf32, #tpu.memory_space<vmem>>, %arg6: memref<8x1xf32, #tpu.memory_space<vmem>>) attributes {dimension_semantics = [#tpu.dimension_semantics<parallel>, #tpu.dimension_semantics<arbitrary>], iteration_bounds = array<i64: 1, 1>, scalar_prefetch = 0 : i64, scratch_operands = 2 : i64, tpu.core_type = #tpu.core_type<tc>, window_params = [{transform_indices = @transform_0, window_bounds = array<i64: 8, 512>}, {transform_indices = @transform_1, window_bounds = array<i64: 8, 512>}, {transform_indices = @transform_2, window_bounds = array<i64: 1, 8, 128>}]} {
    %c0_i32 = arith.constant 0 : i32
    %0 = arith.cmpi eq, %arg1, %c0_i32 : i32
    %1 = arith.extui %0 : i1 to i32
    %c0_i32_0 = arith.constant 0 : i32
    %2 = arith.cmpi ne, %1, %c0_i32_0 : i32
    scf.if %2 {
      %cst_16 = arith.constant 0.000000e+00 : f32
      %22 = vector.broadcast %cst_16 : f32 to vector<8x1xf32>
      %c0_17 = arith.constant 0 : index
      %c0_18 = arith.constant 0 : index
      %23 = vector.load %arg5[%c0_17, %c0_18] : memref<8x1xf32, #tpu.memory_space<vmem>>, vector<8x1xf32>
      tpu.vector_store %arg5[%c0_17, %c0_18], %22 {strides = array<i32>} : memref<8x1xf32, #tpu.memory_space<vmem>>, vector<8x1xf32>,
      %cst_19 = arith.constant 0.000000e+00 : f32
      %24 = vector.broadcast %cst_19 : f32 to vector<8x1xf32>
      %c0_20 = arith.constant 0 : index
      %c0_21 = arith.constant 0 : index
      %25 = vector.load %arg6[%c0_20, %c0_21] : memref<8x1xf32, #tpu.memory_space<vmem>>, vector<8x1xf32>
      tpu.vector_store %arg6[%c0_20, %c0_21], %24 {strides = array<i32>} : memref<8x1xf32, #tpu.memory_space<vmem>>, vector<8x1xf32>,
    } else {
    }
    %c0 = arith.constant 0 : index
    %c0_1 = arith.constant 0 : index
    %3 = vector.load %arg2[%c0, %c0_1] : memref<8x512xf32, #tpu.memory_space<vmem>>, vector<8x512xf32>
    %c0_2 = arith.constant 0 : index
    %c0_3 = arith.constant 0 : index
    %4 = vector.load %arg3[%c0_2, %c0_3] : memref<8x512xf32, #tpu.memory_space<vmem>>, vector<8x512xf32>
    %c0_4 = arith.constant 0 : index
    %c0_5 = arith.constant 0 : index
    %5 = vector.load %arg5[%c0_4, %c0_5] : memref<8x1xf32, #tpu.memory_space<vmem>>, vector<8x1xf32>
    %6 = arith.mulf %3, %4 : vector<8x512xf32>
    %cst = arith.constant dense<0.000000e+00> : vector<8xf32>
    %7 = vector.multi_reduction <add>, %6, %cst [1] : vector<8x512xf32> to vector<8xf32>
    %8 = vector.shape_cast %7 : vector<8xf32> to vector<8x1xf32>
    %9 = arith.addf %5, %8 : vector<8x1xf32>
    %c0_6 = arith.constant 0 : index
    %c0_7 = arith.constant 0 : index
    %10 = vector.load %arg5[%c0_6, %c0_7] : memref<8x1xf32, #tpu.memory_space<vmem>>, vector<8x1xf32>
    tpu.vector_store %arg5[%c0_6, %c0_7], %9 {strides = array<i32>} : memref<8x1xf32, #tpu.memory_space<vmem>>, vector<8x1xf32>,
    %c0_8 = arith.constant 0 : index
    %c0_9 = arith.constant 0 : index
    %11 = vector.load %arg6[%c0_8, %c0_9] : memref<8x1xf32, #tpu.memory_space<vmem>>, vector<8x1xf32>
    %cst_10 = arith.constant dense<0.000000e+00> : vector<8xf32>
    %12 = vector.multi_reduction <add>, %3, %cst_10 [1] : vector<8x512xf32> to vector<8xf32>
    %13 = vector.shape_cast %12 : vector<8xf32> to vector<8x1xf32>
    %cst_11 = arith.constant dense<0.000000e+00> : vector<8xf32>
    %14 = vector.multi_reduction <add>, %4, %cst_11 [1] : vector<8x512xf32> to vector<8xf32>
    %15 = vector.shape_cast %14 : vector<8xf32> to vector<8x1xf32>
    %16 = arith.addf %13, %15 : vector<8x1xf32>
    %17 = arith.addf %11, %16 : vector<8x1xf32>
    %c0_12 = arith.constant 0 : index
    %c0_13 = arith.constant 0 : index
    %18 = vector.load %arg6[%c0_12, %c0_13] : memref<8x1xf32, #tpu.memory_space<vmem>>, vector<8x1xf32>
    tpu.vector_store %arg6[%c0_12, %c0_13], %17 {strides = array<i32>} : memref<8x1xf32, #tpu.memory_space<vmem>>, vector<8x1xf32>,
    %c0_i32_14 = arith.constant 0 : i32
    %19 = arith.cmpi eq, %arg1, %c0_i32_14 : i32
    %20 = arith.extui %19 : i1 to i32
    %c0_i32_15 = arith.constant 0 : i32
    %21 = arith.cmpi ne, %20, %c0_i32_15 : i32
    scf.if %21 {
      %c0_16 = arith.constant 0 : index
      %c0_17 = arith.constant 0 : index
      %22 = vector.load %arg5[%c0_16, %c0_17] : memref<8x1xf32, #tpu.memory_space<vmem>>, vector<8x1xf32>
      %c0_18 = arith.constant 0 : index
      %c0_19 = arith.constant 0 : index
      %23 = vector.load %arg6[%c0_18, %c0_19] : memref<8x1xf32, #tpu.memory_space<vmem>>, vector<8x1xf32>
      %cst_20 = arith.constant 2.000000e+00 : f32
      %24 = vector.broadcast %cst_20 : f32 to vector<8x1xf32>
      %25 = arith.mulf %24, %22 : vector<8x1xf32>
      %cst_21 = arith.constant 9.99999997E-7 : f32
      %26 = vector.broadcast %cst_21 : f32 to vector<8x1xf32>
      %27 = arith.addf %23, %26 : vector<8x1xf32>
      %28 = arith.divf %25, %27 : vector<8x1xf32>
      %c8_i32 = arith.constant 8 : i32
      %29 = arith.muli %arg0, %c8_i32 : i32
      %30 = tpu.iota {dimensions = array<i32: 0>} : vector<8x1xi32>
      %31 = vector.broadcast %29 : i32 to vector<8x1xi32>
      %32 = arith.addi %31, %30 : vector<8x1xi32>
      %c4_i32 = arith.constant 4 : i32
      %33 = vector.broadcast %c4_i32 : i32 to vector<8x1xi32>
      %34 = arith.cmpi slt, %32, %33 : vector<8x1xi32>
      %cst_22 = arith.constant 1.000000e+00 : f32
      %35 = vector.broadcast %cst_22 : f32 to vector<8x1xf32>
      %36 = arith.subf %35, %28 : vector<8x1xf32>
      %cst_23 = arith.constant 0.000000e+00 : f32
      %37 = vector.broadcast %cst_23 : f32 to vector<8x1xf32>
      %38 = arith.select %34, %36, %37 : vector<8x1xi1>, vector<8x1xf32>
      %39 = vector.shape_cast %38 : vector<8x1xf32> to vector<1x8x1xf32>
      %cst_24 = arith.constant dense<0.000000e+00> : vector<1xf32>
      %40 = vector.multi_reduction <add>, %39, %cst_24 [1, 2] : vector<1x8x1xf32> to vector<1xf32>
      %41 = vector.shape_cast %40 : vector<1xf32> to vector<1x1x1xf32>
      %42 = vector.extract %41[0, 0, 0] : f32 from vector<1x1x1xf32>
      %43 = vector.broadcast %42 : f32 to vector<1x8x128xf32>
      %c0_25 = arith.constant 0 : index
      %c0_26 = arith.constant 0 : index
      %c0_27 = arith.constant 0 : index
      %44 = vector.load %arg4[%c0_25, %c0_26, %c0_27] : memref<1x8x128xf32, #tpu.memory_space<vmem>>, vector<1x8x128xf32>
      tpu.vector_store %arg4[%c0_25, %c0_26, %c0_27], %43 {strides = array<i32>} : memref<1x8x128xf32, #tpu.memory_space<vmem>>, vector<1x8x128xf32>,
    } else {
    }
    return
  }
  func.func @transform_0(%arg0: i32, %arg1: i32) -> (i32, i32) {
    %c1_i32 = arith.constant 1 : i32
    %0 = arith.addi %arg1, %c1_i32 : i32
    %c0_i32 = arith.constant 0 : i32
    return %arg0, %0 : i32, i32
  }
  func.func @transform_1(%arg0: i32, %arg1: i32) -> (i32, i32) {
    %c0_i32 = arith.constant 0 : i32
    return %arg0, %arg1 : i32, i32
  }
  func.func @transform_2(%arg0: i32, %arg1: i32) -> (i32, i32, i32) {
    %c0_i32 = arith.constant 0 : i32
    %c0_i32_0 = arith.constant 0 : i32
    %c0_i32_1 = arith.constant 0 : i32
    return %arg0, %c0_i32, %c0_i32_0 : i32, i32, i32
  }
}

</mosaic_0001>

<bundles_post_ra>
// kernel: tpu_custom_call.1
= control target key start
LH: loop header
LB: loop body
LE: loop exit
PB: predicated region body
PF: predicated region fallthrough
CT: control target
= control target key end

     0   :  { %7 = vsyncpa [#allocation5], 0  ;;  %s294_s0 = inlined_call_operand.hbm [shape: f32[4,1024], index: 0, kind: input, shape index: {}]   ;;  %s295_s1 = inlined_call_operand.hbm [shape: f32[4,512], index: 1, kind: input, shape index: {}]   ;;  %s296_s2 = inlined_call_operand.hbm [shape: f32[1,8,128], index: 2, kind: output, shape index: {}]  }
   0x1   :  { %8 = vsyncpa [#allocation8], 0 }
   0x2   :  { %9 = vsyncpa [#allocation6], 0 }
   0x3   :  { %16 = vsyncadd [#allocation5], 256  ;;  %s169_s11 = scalar_lea.hbm %s294_s0, 256  ;;  %s258_s12 = smov [#allocation4]  }
   0x4   :  { %s19_s13 = sshll.u32 %s258_s12, 4  ;;  %s20_s13 = int_to_ptr.vmem [resolvable:$true] %s19_s13 }
   0x5   :  { %s199_s14 = scalar_lea.vmem %s20_s13, 256  ;;  %s203_s15 = scalar_lea.vmem %s20_s13, 512 }
   0x6   :  { %p200_p0 = scmp.ne.s32.totalorder %s20_s13, %s199_s14  ;;  %p204_p1 = scmp.lt.s32.totalorder %s20_s13, %s20_s13 }
   0x7   :  { %p205_p2 = scmp.lt.s32.totalorder %s203_s15, %s199_s14 }
   0x9   :  { %p206_p3 = por %p205_p2, %p204_p1 }
   0xb   :  { %p207_p4 = pnand %p206_p3, %p200_p0 }
   0xd   :  { %210 = shalt.err (!%p207_p4)
}
   0xe   :  { %s259_s16 = smov 512   ;;  %s260_s17 = smov 256  }
   0xf   :  { %s261_s18 = smov 16  }
  0x10   :  { %25 = dma.hbm_to_vmem [thread:$0]  %s169_s11, 256, %s20_s13, [#allocation5], %s259_s16, %s260_s17, %s261_s18  }
  0x11   :  { %30 = vsyncadd [#allocation8], 256  ;;  %s262_s19 = smov [#allocation7]  }
  0x12   :  { %s31_s20 = sshll.u32 %s262_s19, 4  ;;  %s32_s20 = int_to_ptr.vmem [resolvable:$true] %s31_s20 }
  0x13   :  { %s220_s0 = scalar_lea.vmem %s32_s20, 256  ;;  %s224_s21 = scalar_lea.vmem %s32_s20, 512 }
  0x14   :  { %p221_p5 = scmp.ne.s32.totalorder %s32_s20, %s220_s0  ;;  %p225_p6 = scmp.lt.s32.totalorder %s32_s20, %s32_s20 }
  0x15   :  { %p226_p7 = scmp.lt.s32.totalorder %s224_s21, %s220_s0 }
  0x17   :  { %p227_p8 = por %p226_p7, %p225_p6 }
  0x19   :  { %p228_p9 = pnand %p227_p8, %p221_p5 }
  0x1b   :  { %231 = shalt.err (!%p228_p9)
}
  0x1c   :  { %37 = dma.hbm_to_vmem [thread:$0]  %s295_s1, 256, %s32_s20, [#allocation8], %s260_s17, %s260_s17, %s261_s18  }
  0x1d   :  { %252 = dma.done.wait [#allocation5], 512  }
  0x1e   :  { %253 = vsyncadd [#allocation5], 4294966784 }
  0x1f   :  { %254 = dma.done.wait [#allocation8], 512  }
  0x20   :  { %255 = vsyncadd [#allocation8], 4294966784  ;;  %v53_v0 = vld [vmem:[#allocation4] sm:$0xff]  ;;  %v54_v1 = vld [vmem:[#allocation4 + $0x8] sm:$0xff]  ;;  %vm50_vm0 = vcmask 7168   ;;  %v263_v33 = vmov 0.0   ;;  %v134_v45 = vlaneseq }
  0x21   :  { %v55_v2 = vld [vmem:[#allocation4 + $0x10] sm:$0xff]  ;;  %v56_v3 = vld [vmem:[#allocation4 + $0x18] sm:$0xff]  ;;  %v57_v6 = vld [vmem:[#allocation7] sm:$0xff]  ;;  %52 = vst.msk [vmem:[#allocation3] sm:$0xff] %vm50_vm0, %v263_v33  ;;  %s264_s1 = smov [#allocation9]  }
  0x22   :  { %v91_v4 = vcombine.low %v53_v0, %v55_v2  ;;  %v92_v5 = vcombine.high %v53_v0, %v55_v2  ;;  %v58_v7 = vld [vmem:[#allocation7 + $0x8] sm:$0xff]  ;;  %v93_v8 = vcombine.low %v54_v1, %v56_v3  ;;  %v94_v9 = vcombine.high %v54_v1, %v56_v3  ;;  %v59_v10 = vld [vmem:[#allocation7 + $0x10] sm:$0xff]  ;;  %v60_v11 = vld [vmem:[#allocation7 + $0x18] sm:$0xff]  ;;  %51 = vst.msk [vmem:[#allocation2] sm:$0xff] %vm50_vm0, %v263_v33  ;;  %s159_s24 = sshll.u32 %s264_s1, 4  ;;  %s160_s24 = int_to_ptr.vmem [resolvable:$true] %s159_s24 }
  0x23   :  { %v62_v12 = vmul.f32 %v57_v6, %v53_v0  ;;  %v63_v13 = vmul.f32 %v58_v7, %v54_v1  ;;  %v108_v15 = vcombine.low %v57_v6, %v59_v10  ;;  %v109_v16 = vcombine.high %v57_v6, %v59_v10  ;;  %s232_s26 = scalar_lea.vmem %s160_s24, 128  ;;  %p237_p11 = scmp.lt.s32.totalorder %s160_s24, %s160_s24 }
  0x24   :  { %v99_v14 = vadd.f32 %v92_v5, %v91_v4  ;;  %v110_v17 = vcombine.low %v58_v7, %v60_v11  ;;  %v64_v18 = vmul.f32 %v59_v10, %v55_v2  ;;  %v65_v19 = vmul.f32 %v60_v11, %v56_v3  ;;  %p233_p10 = scmp.ne.s32.totalorder %s160_s24, %s232_s26  ;;  %p238_p12 = scmp.lt.s32.totalorder %s232_s26, %s232_s26 }
  0x25   :  { %v111_v21 = vcombine.high %v58_v7, %v60_v11  ;;  %v116_v22 = vadd.f32 %v109_v16, %v108_v15  ;;  %v135_v47 = vshrl.u32 %v134_v45, 7 }
  0x26   :  { %v100_v20 = vadd.f32 %v99_v14, %v93_v8  ;;  %v70_v23 = vcombine.low %v62_v12, %v64_v18  ;;  %v71_v24 = vcombine.high %v62_v12, %v64_v18  ;;  %v72_v25 = vcombine.low %v63_v13, %v65_v19  ;;  %p239_p13 = por %p238_p12, %p237_p11 }
  0x27   :  { %v117_v27 = vadd.f32 %v116_v22, %v110_v17  ;;  %v73_v28 = vcombine.high %v63_v13, %v65_v19  ;;  %vm138_vm1 = vcmp.lt.s32.totalorder %v135_v47, 4 }
  0x28   :  { %v101_v26 = vadd.f32 %v100_v20, %v94_v9  ;;  %v78_v29 = vadd.f32 %v71_v24, %v70_v23  ;;  %v86_v37 = vld [vmem:[#allocation3] sm:$0xff]  ;;  %p240_p0 = pnand %p239_p13, %p233_p10 }
  0x29   :  { %v118_v30 = vadd.f32 %v117_v27, %v111_v21  ;;  %v61_v35 = vld [vmem:[#allocation2] sm:$0xff] }
  0x2a   :  { %102 = vadd.xlane.f32.xlu0 %v101_v26  ;;  %v79_v31 = vadd.f32 %v78_v29, %v72_v25 }
  0x2c   :  { %v80_v32 = vadd.f32 %v79_v31, %v73_v28 }
  0x2e   :  { %119 = vadd.xlane.f32.xlu0 %v118_v30  ;;  %81 = vadd.xlane.f32.xlu1 %v80_v32 }
  0xb3   :  { %v103_v34 = vpop.xlane.xlu0 %102 }
  0xb7   :  { %v120_v36 = vpop.xlane.xlu0 %119  ;;  %v82_v39 = vpop.xlane.xlu1 %81 }
  0xb8   :  { %v121_v38 = vadd.f32 %v120_v36, %v103_v34  ;;  %v83_v40 = vadd.f32 %v82_v39, %v61_v35 }
  0xba   :  { %v122_v41 = vadd.f32 %v121_v38, %v86_v37  ;;  %85 = vst.msk [vmem:[#allocation2] sm:$0xff] %vm50_vm0, %v83_v40 }
  0xbc   :  { %123 = vst.msk [vmem:[#allocation3] sm:$0xff] %vm50_vm0, %v122_v41 }
  0xc1   :  { %v127_v44 = vld [vmem:[#allocation2] sm:$0xff] }
  0xc2   :  { %v129_v46 = vmul.f32 2.0, %v127_v44 }
  0xc3   :  { %v128_v42 = vld [vmem:[#allocation3] sm:$0xff] }
  0xc4   :  { %v130_v43 = vadd.f32 1e-06, %v128_v42 }
  0xc6   :  { %187 = vrcp.f32 %v130_v43 }
  0xd3   :  { %v188_v48 = vpop.eup %187 }
  0xd4   :  { %v132_v49 = vmul.f32 %v188_v48, %v129_v46 }
  0xd6   :  { %v139_v50 = vsub.f32 1.0, %v132_v49 }
  0xd8   :  { %v140_v51 = vsel %vm138_vm1, %v139_v50, 0.0 }
  0xd9   :  { %v141_v52 = vsel %vm50_vm0, %v140_v51, 0.0 }
  0xda   :  { %142 = vadd.xlane.f32.xlu1 %v141_v52 }
 0x163   :  { %v143_v53 = vpop.xlane.xlu1 %142 }
 0x164   :  { %v144_v54 = vrot.slane %v143_v53, 4 }
 0x166   :  { %v145_v55 = vadd.f32 %v144_v54, %v143_v53 }
 0x168   :  { %v146_v56 = vrot.slane %v145_v55, 2 }
 0x16a   :  { %v147_v57 = vadd.f32 %v146_v56, %v145_v55 }
 0x16c   :  { %v148_v58 = vrot.slane %v147_v57, 1 }
 0x16e   :  { %v149_v59 = vadd.f32 %v148_v58, %v147_v57 }
 0x170   :  { %170 = vpush %v149_v59 }
 0x1a1   :  { %s171_s25 = spop %170 }
 0x1a2   :  { %v151_v60 = vstv %s171_s25 }
 0x1a3   :  { %152 = vst [vmem:[#allocation9] sm:$0xff] %v151_v60 }
 0x1a4   :  { %243 = shalt.err (!%p240_p0)
}
 0x1a5   :  { %162 = dma.vmem_to_hbm [thread:$0]  %s160_s24, 128, %s296_s2, [#allocation6]  }
 0x1a6   :  { %256 = dma.done.wait [#allocation6], 128  }
 0x1a7   :  { %257 = vsyncadd [#allocation6], 4294967168 }
 0x1a8   :  { %166 = vsyncpa [#allocation5], 1 }
 0x1a9   :  { %167 = vsyncpa [#allocation8], 1 }
 0x1aa   :  { %168 = vsyncpa [#allocation6], 1 }

</bundles_post_ra>
